<compile_context>
chip_gen: v7x
topology: tpu7x:2x2x1
jax: 0.10.0
libtpu: 0.0.40
codegen_flags: <defaults>
</compile_context>

<pallas_src>
from functools import partial

import jax
import jax.numpy as jnp
import numpy as np
from jax.experimental import pallas as pl
from jax.experimental.pallas import tpu as pltpu


def _round_up(x, m):
    return ((x + m - 1) // m) * m


def _globalinfoloss_kernel(xg_ref, c_ref, w1a_ref, w1b_ref, w2_ref, w3_ref,
                           w4_ref, b4_ref, o_ref):
    cdt = xg_ref.dtype  # matmul-input dtype (f32 or bf16); accumulation is f32

    # Layer 1, batch-major, concat fused into two matmuls:
    #   h1 = relu([xg | c] @ W1) = relu(xg @ W1[:64] + c @ W1[64:])
    h1 = jnp.dot(xg_ref[...], w1a_ref[...], preferred_element_type=jnp.float32)
    h1 = h1 + jnp.dot(c_ref[...], w1b_ref[...], preferred_element_type=jnp.float32)
    h1 = jnp.maximum(h1, 0.0).astype(cdt)                 # (TB, 128)

    # Layers 2 & 3 stay batch-major: full M=TB slabs into the MXU.
    h2 = jnp.dot(h1, w2_ref[...], preferred_element_type=jnp.float32)
    h2 = jnp.maximum(h2, 0.0).astype(cdt)                 # (TB, 64)
    h3 = jnp.dot(h2, w3_ref[...], preferred_element_type=jnp.float32)
    h3 = jnp.maximum(h3, 0.0)                             # (TB, 32), f32

    # Epilogue: transpose only the small (TB,32) block so the per-row scalar
    # lands lane-dense, then 32 -> 1 on VPU/XLU:
    #   out[b] = sum_k h3[b,k] * w4[k] + b4
    h3t = h3.T                                            # (32, TB)
    out_row = jnp.sum(w4_ref[...] * h3t, axis=0, keepdims=True)   # (1, TB)
    out_row = out_row + b4_ref[0, 0]
    o_ref[0] = out_row.astype(o_ref.dtype)


def _pallas_mlp(xg, c, weights, TB, num_tiles):
    """Run the fused MLP over `num_tiles` batch tiles of TB rows each.

    Only rows [0, num_tiles * TB) of xg / c are read (the arrays may be
    longer); returns a (num_tiles * TB, 1) float32 array.
    """
    w1a, w1b, w2c, w3c, w4f, b4f = weights
    rows = num_tiles * TB

    bytes_in = 2 * rows * 64 * xg.dtype.itemsize
    bytes_w = sum(int(w.size) * w.dtype.itemsize for w in weights)
    bytes_out = rows * 4
    flops = 2 * rows * (128 * 128 + 128 * 64 + 64 * 32 + 32)

    out = pl.pallas_call(
        _globalinfoloss_kernel,
        out_shape=jax.ShapeDtypeStruct((num_tiles, 1, TB), jnp.float32),
        grid=(num_tiles,),
        in_specs=[
            pl.BlockSpec((TB, 64), lambda i: (i, 0)),       # x_global tile
            pl.BlockSpec((TB, 64), lambda i: (i, 0)),       # c tile
            pl.BlockSpec((64, 128), lambda i: (0, 0)),      # W1[:64]  (VMEM-resident)
            pl.BlockSpec((64, 128), lambda i: (0, 0)),      # W1[64:]
            pl.BlockSpec((128, 64), lambda i: (0, 0)),      # W2
            pl.BlockSpec((64, 32), lambda i: (0, 0)),       # W3
            pl.BlockSpec((32, 1), lambda i: (0, 0)),        # W4
            pl.BlockSpec(memory_space=pltpu.MemorySpace.SMEM),  # bias scalar
        ],
        out_specs=pl.BlockSpec((1, 1, TB), lambda i: (i, 0, 0)),  # lane-dense row
        compiler_params=pltpu.CompilerParams(
            dimension_semantics=("parallel",)),
        cost_estimate=pl.CostEstimate(
            flops=flops, transcendentals=0,
            bytes_accessed=bytes_in + bytes_w + bytes_out),
    )(xg, c, w1a, w1b, w2c, w3c, w4f, b4f)

    return out.reshape(rows, 1)


def _pick_tile(B, tile_b):
    """Batch tile: multiple of 128 (lane width once batch sits on lanes),
    capped at tile_b, and chosen so the main grid has >= 2 tiles when the
    batch is large enough (keeps both v7x TensorCores busy)."""
    B128 = _round_up(max(B, 1), 128)
    if B128 <= 2 * 128:
        return min(tile_b, B128)
    half = _round_up((B128 + 1) // 2, 128)
    return max(128, min(tile_b, half))


@partial(jax.jit, static_argnames=("tile_b",))
def globalinfoloss_forward(x_global, c, params, *, tile_b=8192):
    """x_global: (B, 64), c: (B, 64)  ->  (B, 1) float32.

    Pass bf16 x_global / c (produced upstream, not cast here) for the
    halved-bandwidth bf16 MXU path; accumulation stays f32 either way.
    """
    B = x_global.shape[0]
    w1, w2, w3, w4, b4 = params      # (128,128),(128,64),(64,32),(32,1),(1,1)
    in_dtype = x_global.dtype

    # Tiny one-time weight prep: split W1 for the fused concat; keep the
    # epilogue weights in f32.
    weights = (
        w1[:64].astype(in_dtype),    # (64, 128)
        w1[64:].astype(in_dtype),    # (64, 128)
        w2.astype(in_dtype),         # (128, 64)
        w3.astype(in_dtype),         # (64, 32)
        w4.astype(jnp.float32),      # (32, 1)
        b4.astype(jnp.float32),      # (1, 1)
    )

    TB = _pick_tile(B, tile_b)
    num_main = B // TB
    main_rows = num_main * TB
    tail = B - main_rows

    outs = []
    if num_main > 0:
        # Main grid reads the divisible prefix of the untouched inputs — no
        # full-array pad / copy pass over HBM.
        outs.append(_pallas_mlp(x_global, c, weights, TB, num_main))
    if tail > 0:
        # Ragged tail: slice + pad only the remainder rows (< TB of traffic).
        TB_t = _round_up(tail, 128)
        pad = TB_t - tail
        xg_t = x_global[main_rows:]
        c_t = c[main_rows:]
        if pad:
            xg_t = jnp.pad(xg_t, ((0, pad), (0, 0)))
            c_t = jnp.pad(c_t, ((0, pad), (0, 0)))
        outs.append(_pallas_mlp(xg_t, c_t, weights, TB_t, 1)[:tail])

    if len(outs) == 1:
        return outs[0]
    return jnp.concatenate(outs, axis=0)


def init_params(key):
    """Deterministic synthetic weights, stored as (in, out) for `h @ W`."""
    k1, k2, k3, k4, k5 = jax.random.split(key, 5)
    w1 = jax.random.normal(k1, (128, 128), jnp.float32) * 0.05   # c1: 128 -> 128
    w2 = jax.random.normal(k2, (128, 64), jnp.float32) * 0.05    # c2: 128 -> 64
    w3 = jax.random.normal(k3, (64, 32), jnp.float32) * 0.05     # c3: 64 -> 32
    w4 = jax.random.normal(k4, (32, 1), jnp.float32) * 0.05      # l0 weight: 32 -> 1
    b4 = jax.random.normal(k5, (1, 1), jnp.float32) * 0.05       # l0 bias
    return w1, w2, w3, w4, b4


def reference_forward(x_global, c, params):
    w1, w2, w3, w4, b4 = params
    dot = lambda a, b: jnp.dot(a, b, precision=jax.lax.Precision.HIGHEST)
    xx = jnp.concatenate([x_global.astype(jnp.float32),
                          c.astype(jnp.float32)], axis=1)
    h = jax.nn.relu(dot(xx, w1))
    h = jax.nn.relu(dot(h, w2))
    h = jax.nn.relu(dot(h, w3))
    return dot(h, w4) + b4


if __name__ == "__main__":
    key = jax.random.PRNGKey(0)
    kx, kc, kp = jax.random.split(key, 3)
    params = init_params(kp)

    # 1) Small test matching the module interface: x_global (B,64), c (B,64).
    #    (B=2 -> single 128-row tail tile; exercises the ragged path.)
    B = 2
    x_global = jax.random.normal(kx, (B, 64), jnp.float32)
    c = jax.random.normal(kc, (B, 64), jnp.float32)
    out = jax.block_until_ready(globalinfoloss_forward(x_global, c, params))
    ref = jax.block_until_ready(reference_forward(x_global, c, params))
    assert out.shape == (B, 1), out.shape
    np.testing.assert_allclose(np.asarray(out), np.asarray(ref),
                               rtol=2e-4, atol=2e-5)

    # 2) Multi-tile main grid + ragged tail (no full-array pad path).
    B2 = 300
    kx2, kc2 = jax.random.split(jax.random.PRNGKey(1))
    xg2 = jax.random.normal(kx2, (B2, 64), jnp.float32)
    c2 = jax.random.normal(kc2, (B2, 64), jnp.float32)
    out2 = jax.block_until_ready(
        globalinfoloss_forward(xg2, c2, params, tile_b=128))
    ref2 = jax.block_until_ready(reference_forward(xg2, c2, params))
    assert out2.shape == (B2, 1), out2.shape
    np.testing.assert_allclose(np.asarray(out2), np.asarray(ref2),
                               rtol=2e-4, atol=2e-5)

    # 3) bf16 end-to-end path (producer emits bf16; looser tolerance since
    #    weights/activations are quantized to bf16 inside the kernel).
    B3 = 256
    kx3, kc3 = jax.random.split(jax.random.PRNGKey(2))
    xg3 = jax.random.normal(kx3, (B3, 64), jnp.bfloat16)
    c3 = jax.random.normal(kc3, (B3, 64), jnp.bfloat16)
    out3 = jax.block_until_ready(globalinfoloss_forward(xg3, c3, params))
    ref3 = jax.block_until_ready(reference_forward(xg3, c3, params))
    assert out3.shape == (B3, 1), out3.shape
    np.testing.assert_allclose(np.asarray(out3), np.asarray(ref3),
                               rtol=5e-2, atol=3e-2)

    print("KERNEL_OK")
</pallas_src>

<mosaic_0001>
module attributes {stable_mosaic.version = 11 : i64} {
  func.func @_globalinfoloss_kernel(%arg0: i32, %arg1: memref<128x64xf32, #tpu.memory_space<vmem>>, %arg2: memref<128x64xf32, #tpu.memory_space<vmem>>, %arg3: memref<64x128xf32, #tpu.memory_space<vmem>>, %arg4: memref<64x128xf32, #tpu.memory_space<vmem>>, %arg5: memref<128x64xf32, #tpu.memory_space<vmem>>, %arg6: memref<64x32xf32, #tpu.memory_space<vmem>>, %arg7: memref<32x1xf32, #tpu.memory_space<vmem>>, %arg8: memref<1x1xf32, #tpu.memory_space<smem>>, %arg9: memref<1x1x128xf32, #tpu.memory_space<vmem>>) attributes {dimension_semantics = [#tpu.dimension_semantics<parallel>], iteration_bounds = array<i64: 1>, scalar_prefetch = 0 : i64, scratch_operands = 0 : i64, tpu.core_type = #tpu.core_type<tc>, window_params = [{transform_indices = @transform_0, window_bounds = array<i64: 128, 64>}, {transform_indices = @transform_1, window_bounds = array<i64: 128, 64>}, {pipeline_mode = #tpu.pipeline_mode<synchronous>, transform_indices = @transform_2, window_bounds = array<i64: 64, 128>}, {pipeline_mode = #tpu.pipeline_mode<synchronous>, transform_indices = @transform_3, window_bounds = array<i64: 64, 128>}, {pipeline_mode = #tpu.pipeline_mode<synchronous>, transform_indices = @transform_4, window_bounds = array<i64: 128, 64>}, {pipeline_mode = #tpu.pipeline_mode<synchronous>, transform_indices = @transform_5, window_bounds = array<i64: 64, 32>}, {pipeline_mode = #tpu.pipeline_mode<synchronous>, transform_indices = @transform_6, window_bounds = array<i64: 32, 1>}, {transform_indices = @transform_7, window_bounds = array<i64: 1, 1>}, {transform_indices = @transform_8, window_bounds = array<i64: 1, 1, 128>}]} {
    %c0 = arith.constant 0 : index
    %c0_0 = arith.constant 0 : index
    %0 = vector.load %arg1[%c0, %c0_0] : memref<128x64xf32, #tpu.memory_space<vmem>>, vector<128x64xf32>
    %c0_1 = arith.constant 0 : index
    %c0_2 = arith.constant 0 : index
    %1 = vector.load %arg3[%c0_1, %c0_2] : memref<64x128xf32, #tpu.memory_space<vmem>>, vector<64x128xf32>
    %cst = arith.constant dense<0.000000e+00> : vector<128x128xf32>
    %2 = tpu.matmul %0, %1, %cst {dimension_numbers = #tpu.dot_dimension_numbers<[1], [0], [0], [1], [0, 0, 1, 1], [], []>} : vector<128x64xf32>, vector<64x128xf32>, vector<128x128xf32> -> vector<128x128xf32>
    %c0_3 = arith.constant 0 : index
    %c0_4 = arith.constant 0 : index
    %3 = vector.load %arg2[%c0_3, %c0_4] : memref<128x64xf32, #tpu.memory_space<vmem>>, vector<128x64xf32>
    %c0_5 = arith.constant 0 : index
    %c0_6 = arith.constant 0 : index
    %4 = vector.load %arg4[%c0_5, %c0_6] : memref<64x128xf32, #tpu.memory_space<vmem>>, vector<64x128xf32>
    %cst_7 = arith.constant dense<0.000000e+00> : vector<128x128xf32>
    %5 = tpu.matmul %3, %4, %cst_7 {dimension_numbers = #tpu.dot_dimension_numbers<[1], [0], [0], [1], [0, 0, 1, 1], [], []>} : vector<128x64xf32>, vector<64x128xf32>, vector<128x128xf32> -> vector<128x128xf32>
    %6 = arith.addf %2, %5 : vector<128x128xf32>
    %cst_8 = arith.constant 0.000000e+00 : f32
    %7 = vector.broadcast %cst_8 : f32 to vector<128x128xf32>
    %8 = arith.maximumf %6, %7 : vector<128x128xf32>
    %c0_9 = arith.constant 0 : index
    %c0_10 = arith.constant 0 : index
    %9 = vector.load %arg5[%c0_9, %c0_10] : memref<128x64xf32, #tpu.memory_space<vmem>>, vector<128x64xf32>
    %cst_11 = arith.constant dense<0.000000e+00> : vector<128x64xf32>
    %10 = tpu.matmul %8, %9, %cst_11 {dimension_numbers = #tpu.dot_dimension_numbers<[1], [0], [0], [1], [0, 0, 1, 1], [], []>} : vector<128x128xf32>, vector<128x64xf32>, vector<128x64xf32> -> vector<128x64xf32>
    %cst_12 = arith.constant 0.000000e+00 : f32
    %11 = vector.broadcast %cst_12 : f32 to vector<128x64xf32>
    %12 = arith.maximumf %10, %11 : vector<128x64xf32>
    %c0_13 = arith.constant 0 : index
    %c0_14 = arith.constant 0 : index
    %13 = vector.load %arg6[%c0_13, %c0_14] : memref<64x32xf32, #tpu.memory_space<vmem>>, vector<64x32xf32>
    %cst_15 = arith.constant dense<0.000000e+00> : vector<128x32xf32>
    %14 = tpu.matmul %12, %13, %cst_15 {dimension_numbers = #tpu.dot_dimension_numbers<[1], [0], [0], [1], [0, 0, 1, 1], [], []>} : vector<128x64xf32>, vector<64x32xf32>, vector<128x32xf32> -> vector<128x32xf32>
    %cst_16 = arith.constant 0.000000e+00 : f32
    %15 = vector.broadcast %cst_16 : f32 to vector<128x32xf32>
    %16 = arith.maximumf %14, %15 : vector<128x32xf32>
    %17 = tpu.transpose %16, [1, 0] : vector<128x32xf32> -> vector<32x128xf32>
    %c0_17 = arith.constant 0 : index
    %c0_18 = arith.constant 0 : index
    %18 = vector.load %arg7[%c0_17, %c0_18] : memref<32x1xf32, #tpu.memory_space<vmem>>, vector<32x1xf32>
    %19 = vector.broadcast %18 : vector<32x1xf32> to vector<32x128xf32>
    %20 = arith.mulf %19, %17 : vector<32x128xf32>
    %cst_19 = arith.constant dense<0.000000e+00> : vector<128xf32>
    %21 = vector.multi_reduction <add>, %20, %cst_19 [0] : vector<32x128xf32> to vector<128xf32>
    %22 = vector.shape_cast %21 : vector<128xf32> to vector<1x128xf32>
    %c0_20 = arith.constant 0 : index
    %c0_21 = arith.constant 0 : index
    %23 = memref.load %arg8[%c0_20, %c0_21] : memref<1x1xf32, #tpu.memory_space<smem>>
    %24 = vector.broadcast %23 : f32 to vector<1x128xf32>
    %25 = arith.addf %22, %24 : vector<1x128xf32>
    %c0_22 = arith.constant 0 : index
    %c0_23 = arith.constant 0 : index
    %c0_24 = arith.constant 0 : index
    %26 = vector.load %arg9[%c0_22, %c0_23, %c0_24] : memref<1x1x128xf32, #tpu.memory_space<vmem>>, vector<1x1x128xf32>
    %27 = vector.shape_cast %26 : vector<1x1x128xf32> to vector<1x128xf32>
    %28 = vector.shape_cast %25 : vector<1x128xf32> to vector<1x1x128xf32>
    tpu.vector_store %arg9[%c0_22, %c0_23, %c0_24], %28 {strides = array<i32>} : memref<1x1x128xf32, #tpu.memory_space<vmem>>, vector<1x1x128xf32>,
    return
  }
  func.func @transform_0(%arg0: i32) -> (i32, i32) {
    %c0_i32 = arith.constant 0 : i32
    %c0_i32_0 = arith.constant 0 : i32
    return %arg0, %c0_i32 : i32, i32
  }
  func.func @transform_1(%arg0: i32) -> (i32, i32) {
    %c0_i32 = arith.constant 0 : i32
    %c0_i32_0 = arith.constant 0 : i32
    return %arg0, %c0_i32 : i32, i32
  }
  func.func @transform_2(%arg0: i32) -> (i32, i32) {
    %c0_i32 = arith.constant 0 : i32
    %c0_i32_0 = arith.constant 0 : i32
    %c0_i32_1 = arith.constant 0 : i32
    return %c0_i32, %c0_i32_0 : i32, i32
  }
  func.func @transform_3(%arg0: i32) -> (i32, i32) {
    %c0_i32 = arith.constant 0 : i32
    %c0_i32_0 = arith.constant 0 : i32
    %c0_i32_1 = arith.constant 0 : i32
    return %c0_i32, %c0_i32_0 : i32, i32
  }
  func.func @transform_4(%arg0: i32) -> (i32, i32) {
    %c0_i32 = arith.constant 0 : i32
    %c0_i32_0 = arith.constant 0 : i32
    %c0_i32_1 = arith.constant 0 : i32
    return %c0_i32, %c0_i32_0 : i32, i32
  }
  func.func @transform_5(%arg0: i32) -> (i32, i32) {
    %c0_i32 = arith.constant 0 : i32
    %c0_i32_0 = arith.constant 0 : i32
    %c0_i32_1 = arith.constant 0 : i32
    return %c0_i32, %c0_i32_0 : i32, i32
  }
  func.func @transform_6(%arg0: i32) -> (i32, i32) {
    %c0_i32 = arith.constant 0 : i32
    %c0_i32_0 = arith.constant 0 : i32
    %c0_i32_1 = arith.constant 0 : i32
    return %c0_i32, %c0_i32_0 : i32, i32
  }
  func.func @transform_7(%arg0: i32) -> (i32, i32) {
    %c0_i32 = arith.constant 0 : i32
    %c0_i32_0 = arith.constant 0 : i32
    %c0_i32_1 = arith.constant 0 : i32
    return %c0_i32, %c0_i32_0 : i32, i32
  }
  func.func @transform_8(%arg0: i32) -> (i32, i32, i32) {
    %c0_i32 = arith.constant 0 : i32
    %c0_i32_0 = arith.constant 0 : i32
    %c0_i32_1 = arith.constant 0 : i32
    return %arg0, %c0_i32, %c0_i32_0 : i32, i32, i32
  }
}

</mosaic_0001>

<bundles_post_ra>
// kernel: globalinfoloss_forward.1
= control target key start
LH: loop header
LB: loop body
LE: loop exit
PB: predicated region body
PF: predicated region fallthrough
CT: control target
= control target key end

     0   :  { %vm78_vm0 = vcmask 523264   ;;  %s1747_s3 = inlined_call_operand.vmem [shape: f32[64,128], index: 3, kind: input, shape index: {}]   ;;  %s1748_s1 = inlined_call_operand.vmem [shape: f32[128,64], index: 1, kind: input, shape index: {}]   ;;  %s1749_s2 = inlined_call_operand.vmem [shape: f32[64,128], index: 2, kind: input, shape index: {}]   ;;  %s1750_s4 = inlined_call_operand.vmem [shape: f32[128,64], index: 4, kind: input, shape index: {}]   ;;  %s1751_s0 = inlined_call_operand.vmem [shape: f32[128,64], index: 0, kind: input, shape index: {}]   ;;  %s1752_s5 = inlined_call_operand.vmem [shape: f32[64,32], index: 5, kind: input, shape index: {}]   ;;  %s1753_s6 = inlined_call_operand.vmem [shape: f32[32,1], index: 6, kind: input, shape index: {}]   ;;  %s1754_s7 = inlined_call_operand.<no memory space> [shape: f32[1,1], index: 7, kind: input, shape index: {}]   ;;  %s1755_s8 = inlined_call_operand.vmem [shape: f32[1,1,128], index: 8, kind: output, shape index: {}]  }
   0x1   :  { %v70_v0 = vld [vmem:[%s1747_s3] sm:$0xff]  ;;  %v71_v1 = vld [vmem:[%s1747_s3 + $0x8] sm:$0xff]  ;;  %v72_v2 = vld [vmem:[%s1747_s3 + $0x10] sm:$0xff] }
   0x2   :  { %v1280_v3 = vpack.c.bf16 %v71_v1, %v70_v0  ;;  %v73_v4 = vld [vmem:[%s1747_s3 + $0x18] sm:$0xff]  ;;  %v74_v6 = vld [vmem:[%s1747_s3 + $0x20] sm:$0xff]  ;;  %v75_v7 = vld [vmem:[%s1747_s3 + $0x28] sm:$0xff] }
   0x3   :  { %v1284_v5 = vpack.c.bf16 %v73_v4, %v72_v2  ;;  %v54_v8 = vld [vmem:[%s1748_s1] sm:$0xff]  ;;  %v1288_v9 = vpack.c.bf16 %v75_v7, %v74_v6  ;;  %v76_v10 = vld [vmem:[%s1747_s3 + $0x30] sm:$0xff]  ;;  %v77_v11 = vld [vmem:[%s1747_s3 + $0x38] sm:$0xff] }
   0x4   :  { %1281 = vmatprep.subr.bf16.mxu0 %v1280_v3  ;;  %1120 = vmatprep.mubr.msk.f32.mxu0 %vm78_vm0, %v54_v8  ;;  %v1292_v12 = vpack.c.bf16 %v77_v11, %v76_v10  ;;  %v46_v13 = vld [vmem:[%s1749_s2] sm:$0xff]  ;;  %v47_v14 = vld [vmem:[%s1749_s2 + $0x8] sm:$0xff]  ;;  %v48_v16 = vld [vmem:[%s1749_s2 + $0x10] sm:$0xff] }
   0x5   :  { %1283 = vmatpush3.bf16.msra.mxu0 %v1280_v3  ;;  %v1296_v15 = vpack.c.bf16 %v47_v14, %v46_v13  ;;  %v49_v17 = vld [vmem:[%s1749_s2 + $0x18] sm:$0xff]  ;;  %v55_v18 = vld [vmem:[%s1748_s1 + $0x8] sm:$0xff]  ;;  %v481_v19 = vld [vmem:[%s1750_s4] sm:$0xff] }
   0x6   :  { %1285 = vmatprep.subr.bf16.mxu0 %v1284_v5  ;;  %v482_v20 = vld [vmem:[%s1750_s4 + $0x8] sm:$0xff]  ;;  %v56_v21 = vld [vmem:[%s1748_s1 + $0x10] sm:$0xff]  ;;  %v1300_v22 = vpack.c.bf16 %v49_v17, %v48_v16  ;;  %v484_v25 = vld [vmem:[%s1750_s4 + $0x18] sm:$0xff] }
   0x7   :  { %v1493_v23 = vpack.c.bf16 %v482_v20, %v481_v19  ;;  %v483_v24 = vld [vmem:[%s1750_s4 + $0x10] sm:$0xff]  ;;  %v50_v26 = vld [vmem:[%s1749_s2 + $0x20] sm:$0xff]  ;;  %v51_v27 = vld [vmem:[%s1749_s2 + $0x28] sm:$0xff] }
   0x8   :  { %v57_v28 = vld [vmem:[%s1748_s1 + $0x18] sm:$0xff]  ;;  %v1513_v29 = vpack.c.bf16 %v484_v25, %v483_v24  ;;  %v58_v30 = vld [vmem:[%s1748_s1 + $0x20] sm:$0xff]  ;;  %v1304_v31 = vpack.c.bf16 %v51_v27, %v50_v26  ;;  %v486_v33 = vld [vmem:[%s1750_s4 + $0x28] sm:$0xff] }
   0x9   :  { %1287 = vmatpush3.bf16.msra.mxu0 %v1284_v5  ;;  %1360 = vmatprep.subr.bf16.mxu1 %v1493_v23  ;;  %v485_v32 = vld [vmem:[%s1750_s4 + $0x20] sm:$0xff]  ;;  %v52_v34 = vld [vmem:[%s1749_s2 + $0x30] sm:$0xff]  ;;  %v53_v35 = vld [vmem:[%s1749_s2 + $0x38] sm:$0xff] }
   0xa   :  { %1289 = vmatprep.subr.bf16.mxu0 %v1288_v9  ;;  %1368 = vmatpush3.bf16.msra.mxu1 %v1493_v23  ;;  %v59_v36 = vld [vmem:[%s1748_s1 + $0x28] sm:$0xff]  ;;  %v1537_v37 = vpack.c.bf16 %v486_v33, %v485_v32  ;;  %v60_v38 = vld [vmem:[%s1748_s1 + $0x30] sm:$0xff]  ;;  %v1308_v39 = vpack.c.bf16 %v53_v35, %v52_v34  ;;  %v488_v41 = vld [vmem:[%s1750_s4 + $0x38] sm:$0xff] }
   0xb   :  { %1361 = vmatprep.subr.bf16.mxu1 %v1513_v29  ;;  %v487_v40 = vld [vmem:[%s1750_s4 + $0x30] sm:$0xff]  ;;  %v61_v42 = vld [vmem:[%s1748_s1 + $0x38] sm:$0xff]  ;;  %v62_v44 = vld [vmem:[%s1748_s1 + $0x40] sm:$0xff] }
   0xc   :  { %v1555_v43 = vpack.c.bf16 %v488_v41, %v487_v40  ;;  %v489_v45 = vld [vmem:[%s1750_s4 + $0x40] sm:$0xff]  ;;  %v490_v46 = vld [vmem:[%s1750_s4 + $0x48] sm:$0xff]  ;;  %v64_v49 = vld [vmem:[%s1748_s1 + $0x50] sm:$0xff] }
   0xd   :  { %1291 = vmatpush3.bf16.msra.mxu0 %v1288_v9  ;;  %v63_v47 = vld [vmem:[%s1748_s1 + $0x48] sm:$0xff]  ;;  %v1328_v48 = vpack.c.bf16 %v490_v46, %v489_v45  ;;  %v491_v50 = vld [vmem:[%s1750_s4 + $0x50] sm:$0xff]  ;;  %v492_v51 = vld [vmem:[%s1750_s4 + $0x58] sm:$0xff] }
   0xe   :  { %1293 = vmatprep.subr.bf16.mxu0 %v1292_v12  ;;  %1369 = vmatpush3.bf16.msra.mxu1 %v1513_v29  ;;  %v65_v52 = vld [vmem:[%s1748_s1 + $0x58] sm:$0xff]  ;;  %v1332_v53 = vpack.c.bf16 %v492_v51, %v491_v50  ;;  %v66_v54 = vld [vmem:[%s1748_s1 + $0x60] sm:$0xff]  ;;  %v494_v56 = vld [vmem:[%s1750_s4 + $0x68] sm:$0xff] }
   0xf   :  { %1362 = vmatprep.subr.bf16.mxu1 %v1537_v37  ;;  %v493_v55 = vld [vmem:[%s1750_s4 + $0x60] sm:$0xff]  ;;  %v67_v57 = vld [vmem:[%s1748_s1 + $0x68] sm:$0xff]  ;;  %v68_v59 = vld [vmem:[%s1748_s1 + $0x70] sm:$0xff] }
  0x10   :  { %v1336_v58 = vpack.c.bf16 %v494_v56, %v493_v55  ;;  %v69_v60 = vld [vmem:[%s1748_s1 + $0x78] sm:$0xff]  ;;  %v30_v61 = vld [vmem:[%s1751_s0] sm:$0xff]  ;;  %v31_v62 = vld [vmem:[%s1751_s0 + $0x8] sm:$0xff] }
  0x11   :  { %1295 = vmatpush3.bf16.msra.mxu0 %v1292_v12  ;;  %v32_v63 = vld [vmem:[%s1751_s0 + $0x10] sm:$0xff]  ;;  %v33_v0 = vld [vmem:[%s1751_s0 + $0x18] sm:$0xff]  ;;  %v34_v1 = vld [vmem:[%s1751_s0 + $0x20] sm:$0xff] }
  0x12   :  { %1297 = vmatprep.subr.bf16.mxu0 %v1296_v15  ;;  %1370 = vmatpush3.bf16.msra.mxu1 %v1537_v37  ;;  %v35_v2 = vld [vmem:[%s1751_s0 + $0x28] sm:$0xff]  ;;  %v36_v3 = vld [vmem:[%s1751_s0 + $0x30] sm:$0xff]  ;;  %v37_v4 = vld [vmem:[%s1751_s0 + $0x38] sm:$0xff] }
  0x13   :  { %1363 = vmatprep.subr.bf16.mxu1 %v1555_v43  ;;  %v38_v5 = vld [vmem:[%s1751_s0 + $0x40] sm:$0xff]  ;;  %v39_v6 = vld [vmem:[%s1751_s0 + $0x48] sm:$0xff]  ;;  %v40_v7 = vld [vmem:[%s1751_s0 + $0x50] sm:$0xff] }
  0x14   :  { %1121 = vmatmul.mubr.msk.f32.vlgmr.msra.gmra.mrb[0].mxu0 %vm78_vm0, %v55_v18  ;;  %v41_v8 = vld [vmem:[%s1751_s0 + $0x58] sm:$0xff]  ;;  %v42_v9 = vld [vmem:[%s1751_s0 + $0x60] sm:$0xff]  ;;  %v43_v10 = vld [vmem:[%s1751_s0 + $0x68] sm:$0xff] }
  0x15   :  { %1299 = vmatpush3.bf16.msra.mxu0 %v1296_v15  ;;  %1123 = vmatprep.mubr.msk.f32.mxu0 %vm78_vm0, %v56_v21  ;;  %v44_v11 = vld [vmem:[%s1751_s0 + $0x70] sm:$0xff]  ;;  %v45_v12 = vld [vmem:[%s1751_s0 + $0x78] sm:$0xff]  ;;  %v658_v16 = vld [vmem:[%s1752_s5] sm:$0xff] }
  0x16   :  { %1301 = vmatprep.subr.bf16.mxu0 %v1300_v22  ;;  %1371 = vmatpush3.bf16.msra.mxu1 %v1555_v43  ;;  %v495_v13 = vld [vmem:[%s1750_s4 + $0x70] sm:$0xff]  ;;  %v496_v14 = vld [vmem:[%s1750_s4 + $0x78] sm:$0xff]  ;;  %v659_v17 = vld [vmem:[%s1752_s5 + $0x8] sm:$0xff] }
  0x17   :  { %1364 = vmatprep.subr.bf16.mxu1 %v1328_v48  ;;  %v1340_v15 = vpack.c.bf16 %v496_v14, %v495_v13  ;;  %v1344_v18 = vpack.c.bf16 %v659_v17, %v658_v16  ;;  %v662_v35 = vld [vmem:[%s1752_s5 + $0x20] sm:$0xff] }
  0x18   :  { %1124 = vmatmul.mubr.msk.f32.gmra.mrb[2].mxu0 %vm78_vm0, %v57_v28  ;;  %v660_v28 = vld [vmem:[%s1752_s5 + $0x10] sm:$0xff] }
  0x19   :  { %1126 = vmatprep.mubr.msk.f32.mxu0 %vm78_vm0, %v58_v30  ;;  %1303 = vmatpush3.bf16.msra.mxu0 %v1300_v22 }
  0x1a   :  { %1305 = vmatprep.subr.bf16.mxu0 %v1304_v31  ;;  %1372 = vmatpush3.bf16.msra.mxu1 %v1328_v48 }
  0x1b   :  { %1365 = vmatprep.subr.bf16.mxu1 %v1332_v53 }
  0x1c   :  { %1127 = vmatmul.mubr.msk.f32.gmra.mrb[4].mxu0 %vm78_vm0, %v59_v36  ;;  %v663_v36 = vld [vmem:[%s1752_s5 + $0x28] sm:$0xff] }
  0x1d   :  { %1129 = vmatprep.mubr.msk.f32.mxu0 %vm78_vm0, %v60_v38  ;;  %1307 = vmatpush3.bf16.msra.mxu0 %v1304_v31  ;;  %v1352_v40 = vpack.c.bf16 %v663_v36, %v662_v35 }
  0x1e   :  { %1309 = vmatprep.subr.bf16.mxu0 %v1308_v39  ;;  %1373 = vmatpush3.bf16.msra.mxu1 %v1332_v53 }
  0x1f   :  { %1366 = vmatprep.subr.bf16.mxu1 %v1336_v58 }
  0x20   :  { %1130 = vmatmul.mubr.msk.f32.gmra.mrb[6].mxu0 %vm78_vm0, %v61_v42  ;;  %v664_v42 = vld [vmem:[%s1752_s5 + $0x30] sm:$0xff] }
  0x21   :  { %1132 = vmatprep.mubr.msk.f32.mxu0 %vm78_vm0, %v62_v44  ;;  %1311 = vmatpush3.bf16.msra.mxu0 %v1308_v39 }
  0x22   :  { %1313 = vmatprep.subr.bf16.mxu0 %v1493_v23  ;;  %1374 = vmatpush3.bf16.msra.mxu1 %v1336_v58 }
  0x23   :  { %1367 = vmatprep.subr.bf16.mxu1 %v1340_v15 }
  0x24   :  { %1133 = vmatmul.mubr.msk.f32.gmra.mrb[8].mxu0 %vm78_vm0, %v63_v47 }
  0x25   :  { %1135 = vmatprep.mubr.msk.f32.mxu0 %vm78_vm0, %v64_v49 }
  0x26   :  { %1375 = vmatpush3.bf16.msra.mxu1 %v1340_v15 }
  0x27   :  { %1345 = vmatprep.subr.bf16.mxu1 %v1344_v18 }
  0x28   :  { %1136 = vmatmul.mubr.msk.f32.gmra.mrb[10].mxu0 %vm78_vm0, %v65_v52 }
  0x29   :  { %1138 = vmatprep.mubr.msk.f32.mxu0 %vm78_vm0, %v66_v54 }
  0x2c   :  { %1139 = vmatmul.mubr.msk.f32.gmra.mrb[12].mxu0 %vm78_vm0, %v67_v57 }
  0x2d   :  { %1141 = vmatprep.mubr.msk.f32.mxu0 %vm78_vm0, %v68_v59 }
  0x30   :  { %1142 = vmatmul.mubr.msk.f32.gmra.mrb[14].mxu0 %vm78_vm0, %v69_v60  ;;  %v1395_v60 = vmov 0  }
  0x31   :  { %1160 = vmatprep.mubr.msk.f32.mxu0 %vm78_vm0, %v30_v61  ;;  %1393 = vset.pattern.permute.xlu0 %v1395_v60  ;;  %v907_v61 = vld [vmem:[%s1753_s6] sm:$0xff] }
  0x32   :  { %1394 = vset.pattern.permute.xlu1 %v1395_v60  ;;  %913 = vperm.xlu0 %1393, %v907_v61  }
  0x34   :  { %1161 = vmatmul.mubr.msk.f32.vlgmr.msra.gmra.mrb[0].mxu0 %vm78_vm0, %v31_v62  ;;  %v908_v62 = vld [vmem:[%s1753_s6 + $0x8] sm:$0xff] }
  0x35   :  { %1163 = vmatprep.mubr.msk.f32.mxu0 %vm78_vm0, %v32_v63  ;;  %1315 = vmatpush3.bf16.msra.mxu0 %v1493_v23 }
  0x36   :  { %1317 = vmatprep.subr.bf16.mxu0 %v1513_v29  ;;  %918 = vperm.xlu0 %1393, %v908_v62  }
  0x38   :  { %1164 = vmatmul.mubr.msk.f32.gmra.mrb[2].mxu0 %vm78_vm0, %v33_v0 }
  0x39   :  { %1166 = vmatprep.mubr.msk.f32.mxu0 %vm78_vm0, %v34_v1  ;;  %1319 = vmatpush3.bf16.msra.mxu0 %v1513_v29  ;;  %v661_v29 = vld [vmem:[%s1752_s5 + $0x18] sm:$0xff] }
  0x3a   :  { %1321 = vmatprep.subr.bf16.mxu0 %v1537_v37  ;;  %v1348_v33 = vpack.c.bf16 %v661_v29, %v660_v28 }
  0x3c   :  { %1167 = vmatmul.mubr.msk.f32.gmra.mrb[4].mxu0 %vm78_vm0, %v35_v2 }
  0x3d   :  { %1169 = vmatprep.mubr.msk.f32.mxu0 %vm78_vm0, %v36_v3  ;;  %1323 = vmatpush3.bf16.msra.mxu0 %v1537_v37 }
  0x3e   :  { %1325 = vmatprep.subr.bf16.mxu0 %v1555_v43 }
  0x40   :  { %1170 = vmatmul.mubr.msk.f32.gmra.mrb[6].mxu0 %vm78_vm0, %v37_v4 }
  0x41   :  { %1172 = vmatprep.mubr.msk.f32.mxu0 %vm78_vm0, %v38_v5  ;;  %1327 = vmatpush3.bf16.msra.mxu0 %v1555_v43  ;;  %v665_v43 = vld [vmem:[%s1752_s5 + $0x38] sm:$0xff] }
  0x42   :  { %1329 = vmatprep.subr.bf16.mxu0 %v1328_v48  ;;  %v1356_v47 = vpack.c.bf16 %v665_v43, %v664_v42 }
  0x44   :  { %1173 = vmatmul.mubr.msk.f32.gmra.mrb[8].mxu0 %vm78_vm0, %v39_v6 }
  0x45   :  { %1175 = vmatprep.mubr.msk.f32.mxu0 %vm78_vm0, %v40_v7  ;;  %1331 = vmatpush3.bf16.msra.mxu0 %v1328_v48 }
  0x46   :  { %1333 = vmatprep.subr.bf16.mxu0 %v1332_v53 }
  0x48   :  { %1176 = vmatmul.mubr.msk.f32.gmra.mrb[10].mxu0 %vm78_vm0, %v41_v8 }
  0x49   :  { %1178 = vmatprep.mubr.msk.f32.mxu0 %vm78_vm0, %v42_v9  ;;  %1335 = vmatpush3.bf16.msra.mxu0 %v1332_v53 }
  0x4a   :  { %1337 = vmatprep.subr.bf16.mxu0 %v1336_v58 }
  0x4c   :  { %1179 = vmatmul.mubr.msk.f32.gmra.mrb[12].mxu0 %vm78_vm0, %v43_v10 }
  0x4d   :  { %1181 = vmatprep.mubr.msk.f32.mxu0 %vm78_vm0, %v44_v11  ;;  %1339 = vmatpush3.bf16.msra.mxu0 %v1336_v58 }
  0x4e   :  { %1341 = vmatprep.subr.bf16.mxu0 %v1340_v15 }
  0x50   :  { %1182 = vmatmul.mubr.msk.f32.gmra.mrb[14].mxu0 %vm78_vm0, %v45_v12 }
  0x51   :  { %1343 = vmatpush3.bf16.msra.mxu0 %v1340_v15 }
 0x107   :  { %v1162_v19 = vpop.f32.mrb[0].mxu0 }
 0x108   :  { %v386_v20 = vpop.f32.mrb[1].mxu0  ;;  %v466_v22 = vmax.f32 %v1162_v19, 0.0 }
 0x109   :  { %v465_v21 = vmax.f32 %v386_v20, 0.0 }
 0x10b   :  { %v1165_v23 = vpop.f32.mrb[2].mxu0  ;;  %1216 = vmatprep.mubr.f32.mxu0 %v465_v21 }
 0x10c   :  { %v396_v24 = vpop.f32.mrb[3].mxu0  ;;  %1217 = vmatmul.mubr.f32.vlgmr.msra.gmra.mrb[16].mxu0 %v466_v22  ;;  %v468_v26 = vmax.f32 %v1165_v23, 0.0 }
 0x10d   :  { %v467_v25 = vmax.f32 %v396_v24, 0.0 }
 0x10f   :  { %v1168_v27 = vpop.f32.mrb[4].mxu0  ;;  %1219 = vmatprep.mubr.f32.mxu0 %v467_v25 }
 0x110   :  { %v406_v30 = vpop.f32.mrb[5].mxu0  ;;  %1220 = vmatmul.mubr.f32.gmra.mrb[18].mxu0 %v468_v26  ;;  %v470_v32 = vmax.f32 %v1168_v27, 0.0 }
 0x111   :  { %v469_v31 = vmax.f32 %v406_v30, 0.0 }
 0x113   :  { %v1171_v34 = vpop.f32.mrb[6].mxu0  ;;  %1222 = vmatprep.mubr.f32.mxu1 %v469_v31  ;;  %v909_v31 = vld [vmem:[%s1753_s6 + $0x10] sm:$0xff] }
 0x114   :  { %v416_v37 = vpop.f32.mrb[7].mxu0  ;;  %1223 = vmatmul.mubr.f32.vlgmr.msra.gmra.mrb[0].mxu1 %v470_v32  ;;  %v472_v39 = vmax.f32 %v1171_v34, 0.0  ;;  %923 = vperm.xlu1 %1394, %v909_v31   ;;  %v910_v32 = vld [vmem:[%s1753_s6 + $0x18] sm:$0xff] }
 0x115   :  { %v471_v38 = vmax.f32 %v416_v37, 0.0  ;;  %1347 = vmatpush3.bf16.msra.mxu1 %v1344_v18 }
 0x116   :  { %1349 = vmatprep.subr.bf16.mxu1 %v1348_v33 }
 0x117   :  { %v1174_v41 = vpop.f32.mrb[8].mxu0  ;;  %1225 = vmatprep.mubr.f32.mxu1 %v471_v38 }
 0x118   :  { %v426_v44 = vpop.f32.mrb[9].mxu0  ;;  %1226 = vmatmul.mubr.f32.gmra.mrb[2].mxu1 %v472_v39  ;;  %v474_v46 = vmax.f32 %v1174_v41, 0.0  ;;  %928 = vperm.xlu1 %1394, %v910_v32  }
 0x119   :  { %v473_v45 = vmax.f32 %v426_v44, 0.0  ;;  %1351 = vmatpush3.bf16.msra.mxu1 %v1348_v33 }
 0x11a   :  { %1353 = vmatprep.subr.bf16.mxu1 %v1352_v40 }
 0x11b   :  { %v1177_v48 = vpop.f32.mrb[10].mxu0  ;;  %1228 = vmatprep.mubr.f32.mxu1 %v473_v45 }
 0x11c   :  { %v436_v49 = vpop.f32.mrb[11].mxu0  ;;  %1229 = vmatmul.mubr.f32.gmra.mrb[4].mxu1 %v474_v46  ;;  %v476_v51 = vmax.f32 %v1177_v48, 0.0 }
 0x11d   :  { %v475_v50 = vmax.f32 %v436_v49, 0.0  ;;  %1355 = vmatpush3.bf16.msra.mxu1 %v1352_v40 }
 0x11e   :  { %1357 = vmatprep.subr.bf16.mxu1 %v1356_v47 }
 0x11f   :  { %v1180_v52 = vpop.f32.mrb[12].mxu0  ;;  %1231 = vmatprep.mubr.f32.mxu1 %v475_v50 }
 0x120   :  { %v446_v53 = vpop.f32.mrb[13].mxu0  ;;  %1232 = vmatmul.mubr.f32.gmra.mrb[6].mxu1 %v476_v51  ;;  %v478_v55 = vmax.f32 %v1180_v52, 0.0 }
 0x121   :  { %v477_v54 = vmax.f32 %v446_v53, 0.0  ;;  %1359 = vmatpush3.bf16.msra.mxu1 %v1356_v47 }
 0x123   :  { %v1183_v56 = vpop.f32.mrb[14].mxu0  ;;  %1234 = vmatprep.mubr.f32.mxu1 %v477_v54 }
 0x124   :  { %v456_v57 = vpop.f32.mrb[15].mxu0  ;;  %1235 = vmatmul.mubr.f32.gmra.mrb[8].mxu1 %v478_v55  ;;  %v480_v59 = vmax.f32 %v1183_v56, 0.0 }
 0x125   :  { %v479_v58 = vmax.f32 %v456_v57, 0.0 }
 0x127   :  { %1237 = vmatprep.mubr.f32.mxu1 %v479_v58 }
 0x128   :  { %1238 = vmatmul.mubr.f32.gmra.mrb[10].mxu1 %v480_v59 }
 0x1df   :  { %v1218_v63 = vpop.f32.mrb[16].mxu0 }
 0x1e0   :  { %v563_v0 = vpop.f32.mrb[17].mxu0  ;;  %v643_v2 = vmax.f32 %v1218_v63, 0.0 }
 0x1e1   :  { %v642_v1 = vmax.f32 %v563_v0, 0.0 }
 0x1e3   :  { %v1221_v3 = vpop.f32.mrb[18].mxu0  ;;  %1256 = vmatprep.mubr.msk.f32.mxu1 %vm78_vm0, %v642_v1  ;;  %v914_v1 = vpop.permute.xlu0 %913 }
 0x1e4   :  { %v573_v4 = vpop.f32.mrb[19].mxu0  ;;  %1257 = vmatmul.mubr.msk.f32.vlgmr.msra.gmra.mrb[12].mxu1 %vm78_vm0, %v643_v2  ;;  %v645_v6 = vmax.f32 %v1221_v3, 0.0 }
 0x1e5   :  { %v644_v5 = vmax.f32 %v573_v4, 0.0 }
 0x1e7   :  { %v1224_v7 = vpop.f32.mrb[0].mxu1  ;;  %1259 = vmatprep.mubr.msk.f32.mxu1 %vm78_vm0, %v644_v5  ;;  %v919_v2 = vpop.permute.xlu0 %918 }
 0x1e8   :  { %v583_v8 = vpop.f32.mrb[1].mxu1  ;;  %1260 = vmatmul.mubr.msk.f32.gmra.mrb[14].mxu1 %vm78_vm0, %v645_v6  ;;  %v647_v10 = vmax.f32 %v1224_v7, 0.0  ;;  %v924_v5 = vpop.permute.xlu1 %923 }
 0x1e9   :  { %v646_v9 = vmax.f32 %v583_v8, 0.0 }
 0x1eb   :  { %v1227_v11 = vpop.f32.mrb[2].mxu1  ;;  %1262 = vmatprep.mubr.msk.f32.mxu1 %vm78_vm0, %v646_v9 }
 0x1ec   :  { %v593_v12 = vpop.f32.mrb[3].mxu1  ;;  %1263 = vmatmul.mubr.msk.f32.gmra.mrb[16].mxu1 %vm78_vm0, %v647_v10  ;;  %v649_v14 = vmax.f32 %v1227_v11, 0.0  ;;  %v929_v11 = vpop.permute.xlu1 %928 }
 0x1ed   :  { %v648_v13 = vmax.f32 %v593_v12, 0.0 }
 0x1ef   :  { %v1230_v15 = vpop.f32.mrb[4].mxu1  ;;  %1265 = vmatprep.mubr.msk.f32.mxu1 %vm78_vm0, %v648_v13 }
 0x1f0   :  { %v603_v16 = vpop.f32.mrb[5].mxu1  ;;  %1266 = vmatmul.mubr.msk.f32.gmra.mrb[18].mxu1 %vm78_vm0, %v649_v14  ;;  %v651_v18 = vmax.f32 %v1230_v15, 0.0 }
 0x1f1   :  { %v650_v17 = vmax.f32 %v603_v16, 0.0 }
 0x1f3   :  { %v1233_v19 = vpop.f32.mrb[6].mxu1  ;;  %1268 = vmatprep.mubr.msk.f32.mxu1 %vm78_vm0, %v650_v17 }
 0x1f4   :  { %v613_v20 = vpop.f32.mrb[7].mxu1  ;;  %1269 = vmatmul.mubr.msk.f32.gmra.mrb[20].mxu1 %vm78_vm0, %v651_v18  ;;  %v653_v22 = vmax.f32 %v1233_v19, 0.0 }
 0x1f5   :  { %v652_v21 = vmax.f32 %v613_v20, 0.0 }
 0x1f7   :  { %v1236_v23 = vpop.f32.mrb[8].mxu1  ;;  %1271 = vmatprep.mubr.msk.f32.mxu1 %vm78_vm0, %v652_v21  ;;  %v945_v21 = vstv %s1754_s7 }
 0x1f8   :  { %v623_v24 = vpop.f32.mrb[9].mxu1  ;;  %1272 = vmatmul.mubr.msk.f32.gmra.mrb[22].mxu1 %vm78_vm0, %v653_v22  ;;  %v655_v26 = vmax.f32 %v1236_v23, 0.0 }
 0x1f9   :  { %v654_v25 = vmax.f32 %v623_v24, 0.0 }
 0x1fb   :  { %v1239_v27 = vpop.f32.mrb[10].mxu1  ;;  %1274 = vmatprep.mubr.msk.f32.mxu1 %vm78_vm0, %v654_v25 }
 0x1fc   :  { %v633_v28 = vpop.f32.mrb[11].mxu1  ;;  %1275 = vmatmul.mubr.msk.f32.gmra.mrb[24].mxu1 %vm78_vm0, %v655_v26  ;;  %v657_v30 = vmax.f32 %v1239_v27, 0.0 }
 0x1fd   :  { %v656_v29 = vmax.f32 %v633_v28, 0.0 }
 0x1ff   :  { %1277 = vmatprep.mubr.msk.f32.mxu1 %vm78_vm0, %v656_v29 }
 0x200   :  { %1278 = vmatmul.mubr.msk.f32.gmra.mrb[26].mxu1 %vm78_vm0, %v657_v30 }
 0x2b7   :  { %v1258_v33 = vpop.f32.mrb[12].mxu1 }
 0x2b8   :  { %v780_v34 = vpop.f32.mrb[13].mxu1  ;;  %v860_v38 = vmax.f32 %v1258_v33, 0.0 }
 0x2b9   :  { %v859_v35 = vmax.f32 %v780_v34, 0.0 }
 0x2bb   :  { %875 = vxpose.xlu0.b32.start [1/16] (narrow) %v859_v35, 32  ;;  %v1261_v36 = vpop.f32.mrb[14].mxu1 }
 0x2bc   :  { %v790_v37 = vpop.f32.mrb[15].mxu1  ;;  %v862_v44 = vmax.f32 %v1261_v36, 0.0 }
 0x2bd   :  { %v861_v41 = vmax.f32 %v790_v37, 0.0 }
 0x2bf   :  { %876 = vxpose.xlu0.b32.cont [2/16] (narrow) %v860_v38, 32  ;;  %v1264_v39 = vpop.f32.mrb[16].mxu1 }
 0x2c0   :  { %v800_v40 = vpop.f32.mrb[17].mxu1  ;;  %v864_v50 = vmax.f32 %v1264_v39, 0.0 }
 0x2c1   :  { %v863_v47 = vmax.f32 %v800_v40, 0.0 }
 0x2c3   :  { %877 = vxpose.xlu0.b32.cont [3/16] (narrow) %v861_v41, 32  ;;  %v1267_v42 = vpop.f32.mrb[18].mxu1 }
 0x2c4   :  { %v810_v43 = vpop.f32.mrb[19].mxu1  ;;  %v866_v56 = vmax.f32 %v1267_v42, 0.0 }
 0x2c5   :  { %v865_v53 = vmax.f32 %v810_v43, 0.0 }
 0x2c7   :  { %878 = vxpose.xlu0.b32.cont [4/16] (narrow) %v862_v44, 32  ;;  %v1270_v45 = vpop.f32.mrb[20].mxu1 }
 0x2c8   :  { %v820_v46 = vpop.f32.mrb[21].mxu1  ;;  %v868_v58 = vmax.f32 %v1270_v45, 0.0 }
 0x2c9   :  { %v867_v57 = vmax.f32 %v820_v46, 0.0 }
 0x2cb   :  { %879 = vxpose.xlu0.b32.cont [5/16] (narrow) %v863_v47, 32  ;;  %v1273_v48 = vpop.f32.mrb[22].mxu1 }
 0x2cc   :  { %v830_v49 = vpop.f32.mrb[23].mxu1  ;;  %v870_v60 = vmax.f32 %v1273_v48, 0.0 }
 0x2cd   :  { %v869_v59 = vmax.f32 %v830_v49, 0.0 }
 0x2cf   :  { %880 = vxpose.xlu0.b32.cont [6/16] (narrow) %v864_v50, 32  ;;  %v1276_v51 = vpop.f32.mrb[24].mxu1 }
 0x2d0   :  { %v840_v52 = vpop.f32.mrb[25].mxu1  ;;  %v872_v62 = vmax.f32 %v1276_v51, 0.0 }
 0x2d1   :  { %v871_v61 = vmax.f32 %v840_v52, 0.0 }
 0x2d3   :  { %881 = vxpose.xlu0.b32.cont [7/16] (narrow) %v865_v53, 32  ;;  %v1279_v54 = vpop.f32.mrb[26].mxu1 }
 0x2d4   :  { %v850_v55 = vpop.f32.mrb[27].mxu1  ;;  %v874_v0 = vmax.f32 %v1279_v54, 0.0 }
 0x2d5   :  { %v873_v63 = vmax.f32 %v850_v55, 0.0 }
 0x2d7   :  { %882 = vxpose.xlu0.b32.cont [8/16] (narrow) %v866_v56, 32 }
 0x2db   :  { %883 = vxpose.xlu0.b32.cont [9/16] (narrow) %v867_v57, 32 }
 0x2df   :  { %884 = vxpose.xlu0.b32.cont [10/16] (narrow) %v868_v58, 32 }
 0x2e3   :  { %885 = vxpose.xlu0.b32.cont [11/16] (narrow) %v869_v59, 32 }
 0x2e7   :  { %886 = vxpose.xlu0.b32.cont [12/16] (narrow) %v870_v60, 32 }
 0x2eb   :  { %887 = vxpose.xlu0.b32.cont [13/16] (narrow) %v871_v61, 32 }
 0x2ef   :  { %888 = vxpose.xlu0.b32.cont [14/16] (narrow) %v872_v62, 32 }
 0x2f3   :  { %889 = vxpose.xlu0.b32.cont [15/16] (narrow) %v873_v63, 32 }
 0x2f7   :  { %890 = vxpose.xlu0.b32.end [16/16] (narrow) %v874_v0, 32 }
 0x33b   :  { %v891_v3 = vpop.trf.xlu0 }
 0x33c   :  { %v931_v8 = vmul.f32 %v914_v1, %v891_v3 }
 0x33f   :  { %v892_v4 = vpop.trf.xlu0 }
 0x340   :  { %v932_v6 = vmul.f32 %v919_v2, %v892_v4 }
 0x342   :  { %v935_v10 = vadd.f32 %v932_v6, %v931_v8 }
 0x343   :  { %v893_v7 = vpop.trf.xlu0 }
 0x344   :  { %v933_v9 = vmul.f32 %v924_v5, %v893_v7 }
 0x346   :  { %v936_v13 = vadd.f32 %v935_v10, %v933_v9 }
 0x347   :  { %v894_v12 = vpop.trf.xlu0 }
 0x348   :  { %v934_v14 = vmul.f32 %v929_v11, %v894_v12 }
 0x34a   :  { %v937_v15 = vadd.f32 %v936_v13, %v934_v14 }
 0x34c   :  { %v938_v16 = vrot.slane %v937_v15, 4 }
 0x34e   :  { %v939_v17 = vadd.f32 %v938_v16, %v937_v15 }
 0x350   :  { %v940_v18 = vrot.slane %v939_v17, 2 }
 0x352   :  { %v941_v19 = vadd.f32 %v940_v18, %v939_v17 }
 0x354   :  { %v942_v20 = vrot.slane %v941_v19, 1 }
 0x356   :  { %v943_v22 = vadd.f32 %v942_v20, %v941_v19 }
 0x358   :  { %v946_v23 = vadd.f32 %v945_v21, %v943_v22 }
 0x35a   :  { %947 = vst [vmem:[%s1755_s8] sm:$0x1] %v946_v23 }

</bundles_post_ra>
